<compile_context>
chip_gen: v5e
topology: v5e:2x2
jax: 0.10.0
libtpu: 0.0.40
codegen_flags: <defaults>
</compile_context>

<pallas_src>
import functools

import jax
import jax.numpy as jnp
from jax.experimental import pallas as pl
from jax.experimental.pallas import tpu as pltpu

EPS = 1e-5


def _round_up(x, m):
    return (x + m - 1) // m * m


def _pick_tile(m, max_tile):
    """Largest multiple of 8 that divides `m` and is <= max_tile (None if none)."""
    cap = min(max_tile, m)
    cap -= cap % 8
    for t in range(cap, 0, -8):
        if m % t == 0:
            return t
    return None


def _default_vmem_limit():
    # Per-generation VMEM budget: ~75% of physical, capped at 100 MiB
    # (v5e/v6e: 96 MiB of 128; v7x: 48 MiB of 64).  Conservative fallback.
    try:
        cap = pltpu.get_tpu_info().vmem_capacity_bytes
    except Exception:
        cap = 64 * 1024 * 1024
    return int(min(cap * 3 // 4, 100 * 1024 * 1024))


_VMEM_LIMIT = _default_vmem_limit()


# ---------------------------------------------------------------------------
# Pass 1: conv-as-matmul (bf16 MXU, f32 acc) + bias, per-tile BN partial stats.
# Grid axis is independent per tile ("parallel"): each tile writes its own rows
# of y and its own (1, 1, embed_dim) partial-sum blocks.
# ---------------------------------------------------------------------------
def _conv_stats_kernel(p_ref, w_ref, b_ref, y_ref, sum_ref, sq_ref, *, embed_dim):
    # MXU matmul: bf16 inputs, f32 accumulation.  K/N lane padding stays internal
    # to the matmul; only the first `embed_dim` columns ever reach HBM.
    z = jnp.dot(p_ref[...], w_ref[...], preferred_element_type=jnp.float32)
    z = z[:, :embed_dim]

    # Per-tile partial statistics of the PRE-bias activations:
    #   * zero-padded patch rows produce exactly-zero rows -> no row mask needed;
    #   * bias is re-added to the mean in the wrapper (variance is bias-invariant),
    #     which removes the bias term from the E[z^2]-E[z]^2 cancellation.
    sum_ref[...] = jnp.sum(z, axis=0, keepdims=True).reshape(1, 1, embed_dim)
    sq_ref[...] = jnp.sum(z * z, axis=0, keepdims=True).reshape(1, 1, embed_dim)

    # Conv output (+bias) stored in bf16: halves the HBM traffic re-read by pass 2.
    y_ref[...] = (z + b_ref[...]).astype(y_ref.dtype)


# ---------------------------------------------------------------------------
# Pass 2: normalize with folded per-channel scale/shift (one FMA per element).
# Purely memory-bound -> big tiles, unpadded (embed_dim-wide) output columns.
# ---------------------------------------------------------------------------
def _bn_apply_kernel(y_ref, scale_ref, shift_ref, out_ref):
    out_ref[...] = (y_ref[...].astype(jnp.float32) * scale_ref[...]
                    + shift_ref[...]).astype(out_ref.dtype)


def _im2col_nchw(x, kh, kw, stride, pad):
    """x: (B, C, H, W) -> ((B*Ho*Wo, C*kh*kw) bf16, Ho, Wo); feature order (c, i, j).

    TODO(synk): fold this gather into pass 1 (NHWC slab + per-tile DMA) so the
    expanded patch matrix never round-trips HBM.
    """
    x = x.astype(jnp.bfloat16)          # emit patches in bf16 (halves HBM traffic)
    B, C, H, W = x.shape
    Ho = (H + 2 * pad - kh) // stride + 1
    Wo = (W + 2 * pad - kw) // stride + 1
    xp = jnp.pad(x, ((0, 0), (0, 0), (pad, pad), (pad, pad)))
    cols = []
    for i in range(kh):
        for j in range(kw):
            cols.append(xp[:, :, i:i + stride * Ho:stride, j:j + stride * Wo:stride])
    cols = jnp.stack(cols, axis=2).reshape(B, C * kh * kw, Ho, Wo)
    cols = cols.transpose(0, 2, 3, 1).reshape(B * Ho * Wo, C * kh * kw)
    return cols, Ho, Wo


@functools.partial(jax.jit,
                   static_argnames=("patch_size", "stride", "max_tile_m", "max_tile_m2"))
def overlap_patch_embed(x, weight, bias, gamma, beta, *,
                        patch_size=7, stride=4, max_tile_m=1024, max_tile_m2=4096):
    """x: (B, C, H, W) NCHW. weight: (embed_dim, C, kh, kw). Returns (out, Ho, Wo)."""
    B = x.shape[0]
    embed_dim = weight.shape[0]
    kh = kw = patch_size
    pad = patch_size // 2

    patches, Ho, Wo = _im2col_nchw(x, kh, kw, stride, pad)       # (M, K) bf16
    M, K = patches.shape

    # ---- tiling -----------------------------------------------------------
    K_pad = _round_up(K, 128)          # MXU-aligned contraction (patch matrix only)
    N_pad = _round_up(embed_dim, 128)  # MXU-aligned output; sliced before any HBM store
    tile_m = _pick_tile(M, max_tile_m)
    if tile_m is None:                 # M has no multiple-of-8 divisor <= cap
        tile_m = _round_up(min(max_tile_m, _round_up(M, 8)), 8)
    M_pad = _round_up(M, tile_m)
    grid_m = M_pad // tile_m

    patches_p = jnp.pad(patches, ((0, M_pad - M), (0, K_pad - K)))   # XLA fuses the pad
    w_p = jnp.pad(weight.reshape(embed_dim, K).T.astype(jnp.bfloat16),
                  ((0, K_pad - K), (0, N_pad - embed_dim)))
    b_e = bias.astype(jnp.float32).reshape(1, embed_dim)
    g_e = gamma.astype(jnp.float32).reshape(1, embed_dim)
    be_e = beta.astype(jnp.float32).reshape(1, embed_dim)

    # ---- pass 1: conv matmul + bias + per-tile BN partial stats ------------
    kernel1 = functools.partial(_conv_stats_kernel, embed_dim=embed_dim)
    y_bf16, part_sum, part_sq = pl.pallas_call(
        kernel1,
        grid=(grid_m,),
        in_specs=[
            pl.BlockSpec((tile_m, K_pad), lambda i: (i, 0)),      # patch tile
            pl.BlockSpec((K_pad, N_pad), lambda i: (0, 0)),       # weight (resident)
            pl.BlockSpec((1, embed_dim), lambda i: (0, 0)),       # bias (resident)
        ],
        out_specs=(
            pl.BlockSpec((tile_m, embed_dim), lambda i: (i, 0)),    # y, unpadded cols
            pl.BlockSpec((1, 1, embed_dim), lambda i: (i, 0, 0)),   # per-tile sum
            pl.BlockSpec((1, 1, embed_dim), lambda i: (i, 0, 0)),   # per-tile sumsq
        ),
        out_shape=(
            jax.ShapeDtypeStruct((M_pad, embed_dim), jnp.bfloat16),
            jax.ShapeDtypeStruct((grid_m, 1, embed_dim), jnp.float32),
            jax.ShapeDtypeStruct((grid_m, 1, embed_dim), jnp.float32),
        ),
        compiler_params=pltpu.CompilerParams(
            dimension_semantics=("parallel",),   # per-tile partials -> megacore OK
            vmem_limit_bytes=_VMEM_LIMIT),
        cost_estimate=pl.CostEstimate(
            flops=2 * M_pad * K_pad * N_pad,
            transcendentals=0,
            bytes_accessed=(M_pad * K_pad * 2 + K_pad * N_pad * 2
                            + M_pad * embed_dim * 2
                            + 2 * grid_m * embed_dim * 4 + embed_dim * 4)),
    )(patches_p, w_p, b_e)

    # ---- fold BN parameters (tiny embed_dim-sized math, tree-reduced) ------
    inv_m = 1.0 / M
    s1 = jnp.sum(part_sum, axis=0)                     # (1, embed_dim)
    s2 = jnp.sum(part_sq, axis=0)
    mean_nb = s1 * inv_m                               # mean of pre-bias activations
    var = jnp.maximum(s2 * inv_m - mean_nb * mean_nb, 0.0)   # biased var (bias-invariant)
    mean = mean_nb + b_e
    scale = g_e * jax.lax.rsqrt(var + EPS)
    shift = be_e - mean * scale

    # ---- pass 2: y * scale + shift, large tiles, unpadded columns ----------
    tile_m2 = _pick_tile(M_pad, max_tile_m2) or tile_m
    out_p = pl.pallas_call(
        _bn_apply_kernel,
        grid=(M_pad // tile_m2,),
        in_specs=[
            pl.BlockSpec((tile_m2, embed_dim), lambda i: (i, 0)),
            pl.BlockSpec((1, embed_dim), lambda i: (0, 0)),
            pl.BlockSpec((1, embed_dim), lambda i: (0, 0)),
        ],
        out_specs=pl.BlockSpec((tile_m2, embed_dim), lambda i: (i, 0)),
        out_shape=jax.ShapeDtypeStruct((M_pad, embed_dim), jnp.float32),
        compiler_params=pltpu.CompilerParams(
            dimension_semantics=("parallel",),
            vmem_limit_bytes=_VMEM_LIMIT),
        cost_estimate=pl.CostEstimate(
            flops=2 * M_pad * embed_dim,
            transcendentals=0,
            bytes_accessed=(M_pad * embed_dim * 2 + M_pad * embed_dim * 4
                            + 2 * embed_dim * 4)),
    )(y_bf16, scale, shift)

    # Row slice is a no-op when tile_m divides M; the reshape is copy-free.
    out = out_p[:M].reshape(B, Ho * Wo, embed_dim)
    return out, Ho, Wo


# ---------------------------------------------------------------------------
# Pure-JAX reference (conv + training-mode BatchNorm + flatten/transpose).
# ---------------------------------------------------------------------------
def _reference(x, weight, bias, gamma, beta, patch_size, stride,
               compute_dtype=jnp.float32):
    pad = patch_size // 2
    y = jax.lax.conv_general_dilated(
        x.astype(compute_dtype), weight.astype(compute_dtype),
        window_strides=(stride, stride),
        padding=[(pad, pad), (pad, pad)],
        dimension_numbers=("NCHW", "OIHW", "NCHW"),
        preferred_element_type=jnp.float32,
    ) + bias[None, :, None, None]
    mean = jnp.mean(y, axis=(0, 2, 3), keepdims=True)
    var = jnp.var(y, axis=(0, 2, 3), keepdims=True)     # biased, as BN normalization
    y = (y - mean) / jnp.sqrt(var + EPS)
    y = y * gamma[None, :, None, None] + beta[None, :, None, None]
    B, C, Ho, Wo = y.shape
    return y.reshape(B, C, Ho * Wo).transpose(0, 2, 1), Ho, Wo


def _run_case(key, *, B, C, H, W, embed_dim, patch_size, stride, max_tile_m):
    kx, kw_, kb, kg, kbe = jax.random.split(key, 5)
    x = jax.random.normal(kx, (B, C, H, W), dtype=jnp.float32)
    weight = jax.random.normal(kw_, (embed_dim, C, patch_size, patch_size),
                               dtype=jnp.float32) * 0.05
    bias = jax.random.normal(kb, (embed_dim,), dtype=jnp.float32) * 0.1
    gamma = 1.0 + 0.1 * jax.random.normal(kg, (embed_dim,), dtype=jnp.float32)
    beta = 0.1 * jax.random.normal(kbe, (embed_dim,), dtype=jnp.float32)

    out, Ho, Wo = overlap_patch_embed(x, weight, bias, gamma, beta,
                                      patch_size=patch_size, stride=stride,
                                      max_tile_m=max_tile_m)
    out = jax.block_until_ready(out)

    ref_q, Ho_r, Wo_r = _reference(x, weight, bias, gamma, beta, patch_size, stride,
                                   compute_dtype=jnp.bfloat16)   # quantization-matched
    ref_f, _, _ = _reference(x, weight, bias, gamma, beta, patch_size, stride,
                             compute_dtype=jnp.float32)

    assert int(Ho) == Ho_r and int(Wo) == Wo_r
    assert out.shape == (B, Ho_r * Wo_r, embed_dim)
    # Matched-quantization check isolates kernel correctness from bf16-input rounding.
    assert jnp.allclose(out, ref_q, rtol=2e-2, atol=2e-2), "mismatch vs bf16-matched reference"
    # Against pure-f32 module semantics; bf16 MXU inputs cost ~1e-2 relative.
    assert jnp.allclose(out, ref_f, rtol=1e-1, atol=1e-1), "mismatch vs f32 reference"


if __name__ == "__main__":
    key = jax.random.PRNGKey(0)
    k1, k2 = jax.random.split(key)
    # Stage-1-style embedding (patch_size=7, stride=4); max_tile_m=8 forces a
    # multi-tile grid so the per-tile partial-stats reduction is exercised.
    _run_case(k1, B=2, C=4, H=16, W=16, embed_dim=32, patch_size=7, stride=4,
              max_tile_m=8)
    # Later-stage embedding (patch_size=3, stride=2); odd spatial size exercises
    # padded (all-zero) patch rows, which are stats-exact without any masking.
    _run_case(k2, B=2, C=8, H=13, W=13, embed_dim=64, patch_size=3, stride=2,
              max_tile_m=16)
    print("KERNEL_OK")
</pallas_src>

<mosaic_0001>
module attributes {stable_mosaic.version = 11 : i64} {
  func.func @_conv_stats_kernel(%arg0: i32, %arg1: memref<8x256xbf16, #tpu.memory_space<vmem>>, %arg2: memref<256x128xbf16, #tpu.memory_space<vmem>>, %arg3: memref<1x32xf32, #tpu.memory_space<vmem>>, %arg4: memref<8x32xbf16, #tpu.memory_space<vmem>>, %arg5: memref<1x1x32xf32, #tpu.memory_space<vmem>>, %arg6: memref<1x1x32xf32, #tpu.memory_space<vmem>>) attributes {dimension_semantics = [#tpu.dimension_semantics<parallel>], iteration_bounds = array<i64: 4>, scalar_prefetch = 0 : i64, scratch_operands = 0 : i64, tpu.core_type = #tpu.core_type<tc>, window_params = [{transform_indices = @transform_0, window_bounds = array<i64: 8, 256>}, {pipeline_mode = #tpu.pipeline_mode<synchronous>, transform_indices = @transform_1, window_bounds = array<i64: 256, 128>}, {pipeline_mode = #tpu.pipeline_mode<synchronous>, transform_indices = @transform_2, window_bounds = array<i64: 1, 32>}, {transform_indices = @transform_3, window_bounds = array<i64: 8, 32>}, {transform_indices = @transform_4, window_bounds = array<i64: 1, 1, 32>}, {transform_indices = @transform_5, window_bounds = array<i64: 1, 1, 32>}]} {
    %c0 = arith.constant 0 : index
    %c0_0 = arith.constant 0 : index
    %0 = vector.load %arg1[%c0, %c0_0] : memref<8x256xbf16, #tpu.memory_space<vmem>>, vector<8x256xbf16>
    %c0_1 = arith.constant 0 : index
    %c0_2 = arith.constant 0 : index
    %1 = vector.load %arg2[%c0_1, %c0_2] : memref<256x128xbf16, #tpu.memory_space<vmem>>, vector<256x128xbf16>
    %cst = arith.constant dense<0.000000e+00> : vector<8x128xf32>
    %2 = tpu.matmul %0, %1, %cst {dimension_numbers = #tpu.dot_dimension_numbers<[1], [0], [0], [1], [0, 0, 1, 1], [], []>} : vector<8x256xbf16>, vector<256x128xbf16>, vector<8x128xf32> -> vector<8x128xf32>
    %3 = vector.extract_strided_slice %2 {offsets = [0, 0], sizes = [8, 32], strides = [1, 1]} : vector<8x128xf32> to vector<8x32xf32>
    %cst_3 = arith.constant dense<0.000000e+00> : vector<32xf32>
    %4 = vector.multi_reduction <add>, %3, %cst_3 [0] : vector<8x32xf32> to vector<32xf32>
    %5 = vector.shape_cast %4 : vector<32xf32> to vector<1x32xf32>
    %6 = vector.shape_cast %5 : vector<1x32xf32> to vector<1x1x32xf32>
    %c0_4 = arith.constant 0 : index
    %c0_5 = arith.constant 0 : index
    %c0_6 = arith.constant 0 : index
    %7 = vector.load %arg5[%c0_4, %c0_5, %c0_6] : memref<1x1x32xf32, #tpu.memory_space<vmem>>, vector<1x1x32xf32>
    tpu.vector_store %arg5[%c0_4, %c0_5, %c0_6], %6 {strides = array<i32>} : memref<1x1x32xf32, #tpu.memory_space<vmem>>, vector<1x1x32xf32>,
    %8 = arith.mulf %3, %3 : vector<8x32xf32>
    %cst_7 = arith.constant dense<0.000000e+00> : vector<32xf32>
    %9 = vector.multi_reduction <add>, %8, %cst_7 [0] : vector<8x32xf32> to vector<32xf32>
    %10 = vector.shape_cast %9 : vector<32xf32> to vector<1x32xf32>
    %11 = vector.shape_cast %10 : vector<1x32xf32> to vector<1x1x32xf32>
    %c0_8 = arith.constant 0 : index
    %c0_9 = arith.constant 0 : index
    %c0_10 = arith.constant 0 : index
    %12 = vector.load %arg6[%c0_8, %c0_9, %c0_10] : memref<1x1x32xf32, #tpu.memory_space<vmem>>, vector<1x1x32xf32>
    tpu.vector_store %arg6[%c0_8, %c0_9, %c0_10], %11 {strides = array<i32>} : memref<1x1x32xf32, #tpu.memory_space<vmem>>, vector<1x1x32xf32>,
    %c0_11 = arith.constant 0 : index
    %c0_12 = arith.constant 0 : index
    %13 = vector.load %arg3[%c0_11, %c0_12] : memref<1x32xf32, #tpu.memory_space<vmem>>, vector<1x32xf32>
    %14 = vector.broadcast %13 : vector<1x32xf32> to vector<8x32xf32>
    %15 = arith.addf %3, %14 : vector<8x32xf32>
    %16 = arith.truncf %15 : vector<8x32xf32> to vector<8x32xbf16>
    %c0_13 = arith.constant 0 : index
    %c0_14 = arith.constant 0 : index
    %17 = vector.load %arg4[%c0_13, %c0_14] : memref<8x32xbf16, #tpu.memory_space<vmem>>, vector<8x32xbf16>
    tpu.vector_store %arg4[%c0_13, %c0_14], %16 {strides = array<i32>} : memref<8x32xbf16, #tpu.memory_space<vmem>>, vector<8x32xbf16>,
    return
  }
  func.func @transform_0(%arg0: i32) -> (i32, i32) {
    %c0_i32 = arith.constant 0 : i32
    %c0_i32_0 = arith.constant 0 : i32
    return %arg0, %c0_i32 : i32, i32
  }
  func.func @transform_1(%arg0: i32) -> (i32, i32) {
    %c0_i32 = arith.constant 0 : i32
    %c0_i32_0 = arith.constant 0 : i32
    %c0_i32_1 = arith.constant 0 : i32
    return %c0_i32, %c0_i32_0 : i32, i32
  }
  func.func @transform_2(%arg0: i32) -> (i32, i32) {
    %c0_i32 = arith.constant 0 : i32
    %c0_i32_0 = arith.constant 0 : i32
    %c0_i32_1 = arith.constant 0 : i32
    return %c0_i32, %c0_i32_0 : i32, i32
  }
  func.func @transform_3(%arg0: i32) -> (i32, i32) {
    %c0_i32 = arith.constant 0 : i32
    %c0_i32_0 = arith.constant 0 : i32
    return %arg0, %c0_i32 : i32, i32
  }
  func.func @transform_4(%arg0: i32) -> (i32, i32, i32) {
    %c0_i32 = arith.constant 0 : i32
    %c0_i32_0 = arith.constant 0 : i32
    %c0_i32_1 = arith.constant 0 : i32
    return %arg0, %c0_i32, %c0_i32_0 : i32, i32, i32
  }
  func.func @transform_5(%arg0: i32) -> (i32, i32, i32) {
    %c0_i32 = arith.constant 0 : i32
    %c0_i32_0 = arith.constant 0 : i32
    %c0_i32_1 = arith.constant 0 : i32
    return %arg0, %c0_i32, %c0_i32_0 : i32, i32, i32
  }
}

module attributes {stable_mosaic.version = 11 : i64} {
  func.func @_bn_apply_kernel(%arg0: i32, %arg1: memref<32x32xbf16, #tpu.memory_space<vmem>>, %arg2: memref<1x32xf32, #tpu.memory_space<vmem>>, %arg3: memref<1x32xf32, #tpu.memory_space<vmem>>, %arg4: memref<32x32xf32, #tpu.memory_space<vmem>>) attributes {dimension_semantics = [#tpu.dimension_semantics<parallel>], iteration_bounds = array<i64: 1>, scalar_prefetch = 0 : i64, scratch_operands = 0 : i64, tpu.core_type = #tpu.core_type<tc>, window_params = [{transform_indices = @transform_0, window_bounds = array<i64: 32, 32>}, {pipeline_mode = #tpu.pipeline_mode<synchronous>, transform_indices = @transform_1, window_bounds = array<i64: 1, 32>}, {pipeline_mode = #tpu.pipeline_mode<synchronous>, transform_indices = @transform_2, window_bounds = array<i64: 1, 32>}, {transform_indices = @transform_3, window_bounds = array<i64: 32, 32>}]} {
    %c0 = arith.constant 0 : index
    %c0_0 = arith.constant 0 : index
    %0 = vector.load %arg1[%c0, %c0_0] : memref<32x32xbf16, #tpu.memory_space<vmem>>, vector<32x32xbf16>
    %1 = arith.extf %0 : vector<32x32xbf16> to vector<32x32xf32>
    %c0_1 = arith.constant 0 : index
    %c0_2 = arith.constant 0 : index
    %2 = vector.load %arg2[%c0_1, %c0_2] : memref<1x32xf32, #tpu.memory_space<vmem>>, vector<1x32xf32>
    %3 = vector.broadcast %2 : vector<1x32xf32> to vector<32x32xf32>
    %4 = arith.mulf %1, %3 : vector<32x32xf32>
    %c0_3 = arith.constant 0 : index
    %c0_4 = arith.constant 0 : index
    %5 = vector.load %arg3[%c0_3, %c0_4] : memref<1x32xf32, #tpu.memory_space<vmem>>, vector<1x32xf32>
    %6 = vector.broadcast %5 : vector<1x32xf32> to vector<32x32xf32>
    %7 = arith.addf %4, %6 : vector<32x32xf32>
    %c0_5 = arith.constant 0 : index
    %c0_6 = arith.constant 0 : index
    %8 = vector.load %arg4[%c0_5, %c0_6] : memref<32x32xf32, #tpu.memory_space<vmem>>, vector<32x32xf32>
    tpu.vector_store %arg4[%c0_5, %c0_6], %7 {strides = array<i32>} : memref<32x32xf32, #tpu.memory_space<vmem>>, vector<32x32xf32>,
    return
  }
  func.func @transform_0(%arg0: i32) -> (i32, i32) {
    %c0_i32 = arith.constant 0 : i32
    %c0_i32_0 = arith.constant 0 : i32
    return %arg0, %c0_i32 : i32, i32
  }
  func.func @transform_1(%arg0: i32) -> (i32, i32) {
    %c0_i32 = arith.constant 0 : i32
    %c0_i32_0 = arith.constant 0 : i32
    %c0_i32_1 = arith.constant 0 : i32
    return %c0_i32, %c0_i32_0 : i32, i32
  }
  func.func @transform_2(%arg0: i32) -> (i32, i32) {
    %c0_i32 = arith.constant 0 : i32
    %c0_i32_0 = arith.constant 0 : i32
    %c0_i32_1 = arith.constant 0 : i32
    return %c0_i32, %c0_i32_0 : i32, i32
  }
  func.func @transform_3(%arg0: i32) -> (i32, i32) {
    %c0_i32 = arith.constant 0 : i32
    %c0_i32_0 = arith.constant 0 : i32
    return %arg0, %c0_i32 : i32, i32
  }
}

</mosaic_0001>

<bundles_post_ra>
// kernel: overlap_patch_embed.3
= control target key start
LH: loop header
LB: loop body
LE: loop exit
PB: predicated region body
PF: predicated region fallthrough
CT: control target
= control target key end

     0   :  { %s140_s0 = inlined_call_operand.vmem [shape: bf16[32,32], index: 0, kind: input, shape index: {}]   ;;  %s141_s1 = inlined_call_operand.vmem [shape: f32[1,32], index: 1, kind: input, shape index: {}]   ;;  %s142_s2 = inlined_call_operand.vmem [shape: f32[1,32], index: 2, kind: input, shape index: {}]   ;;  %s143_s3 = inlined_call_operand.hbm [shape: f32[32,32], index: 3, kind: output, shape index: {}]  }
   0x1   :  { %v63_v0 = vld [vmem:[%s140_s0] sm:$0xff]   ;;  %v70_v5 = vld [vmem:[%s140_s0 + $0x8] sm:$0xff]  }
   0x2   :  { %v74_v1 = vld [vmem:[%s141_s1] ss:$0 sm:$0xff]  ;;  %v64_v2 = vunpack.c.l.bf16 %v63_v0  ;;  %v65_v4 = vunpack.c.h.bf16 %v63_v0  ;;  %v68_v6 = vunpack.c.l.bf16 %v70_v5  ;;  %v69_v7 = vunpack.c.h.bf16 %v70_v5 }
   0x3   :  { %v75_v3 = vld [vmem:[%s142_s2] ss:$0 sm:$0xff] }
   0x4   :  { %8 = vsyncpa [#allocation3], 0  ;;  %v27_v8 = vmul.f32 %v74_v1, %v64_v2  ;;  %v28_v9 = vmul.f32 %v74_v1, %v65_v4  ;;  %vm39_vm0 = vcmask 261120   ;;  %v29_v10 = vmul.f32 %v74_v1, %v68_v6  ;;  %s102_s20 = smov [#allocation2]   ;;  %s50_s23 = sshll.u32 %s143_s3, 4  ;;  %s51_s23 = int_to_ptr.hbm [resolvable:$true] %s50_s23 }
   0x5   :  { %v30_v11 = vmul.f32 %v74_v1, %v69_v7  ;;  %s48_s1 = sshll.u32 %s102_s20, 4  ;;  %s103_s0 = smov 128   ;;  %s49_s1 = int_to_ptr.vmem [resolvable:$true] %s48_s1 }
   0x6   :  { %v35_v12 = vadd.f32 %v75_v3, %v27_v8  ;;  %v36_v13 = vadd.f32 %v75_v3, %v28_v9  ;;  %v37_v14 = vadd.f32 %v75_v3, %v29_v10  ;;  %s104_s2 = smov 8  }
   0x7   :  { %v38_v15 = vadd.f32 %v75_v3, %v30_v11 }
   0x8   :  { %40 = vst.msk [vmem:[#allocation2] sm:$0xff] %vm39_vm0, %v35_v12 }
   0x9   :  { %41 = vst.msk [vmem:[#allocation2 + $0x8] sm:$0xff] %vm39_vm0, %v36_v13 }
   0xa   :  { %42 = vst.msk [vmem:[#allocation2 + $0x10] sm:$0xff] %vm39_vm0, %v37_v14 }
   0xb   :  { %43 = vst.msk [vmem:[#allocation2 + $0x18] sm:$0xff] %vm39_vm0, %v38_v15 }
   0xc   :  { %56 = dma.vmem_to_hbm [thread:$0]  %s49_s1, 512, %s51_s23, [#allocation3], %s103_s0, %s103_s0, %s104_s2  }
   0xd   :  { %100 = dma.done.wait [#allocation3], 512  }
   0xe   :  { %101 = vsyncadd [#allocation3], 4294966784 }
   0xf   :  { %61 = vsyncpa [#allocation3], 1 }

// kernel: overlap_patch_embed.2
= control target key start
LH: loop header
LB: loop body
LE: loop exit
PB: predicated region body
PF: predicated region fallthrough
CT: control target
= control target key end

     0   :  { %s670_s18 = smov 0   ;;  %s750_s0 = inlined_call_operand.vmem [shape: bf16[32,256], index: 0, kind: input, shape index: {}]   ;;  %s751_s1 = inlined_call_operand.vmem [shape: bf16[256,128], index: 1, kind: input, shape index: {}]   ;;  %s752_s2 = inlined_call_operand.vmem [shape: f32[1,32], index: 2, kind: input, shape index: {}]   ;;  %s753_s3 = inlined_call_operand.vmem [shape: bf16[32,32], index: 3, kind: output, shape index: {0}]   ;;  %s754_s4 = inlined_call_operand.vmem [shape: f32[4,1,32], index: 4, kind: output, shape index: {1}]   ;;  %s755_s5 = inlined_call_operand.vmem [shape: f32[4,1,32], index: 5, kind: output, shape index: {2}]  }
   0x1 LB: > { %s532_s19 = sadd.s32 4294967295, %s638_s18   ;;  %p536_p0 = scmp.ge.s32.totalorder %s638_s18, 1  ;;  %s638_s18 = sphi %s670_s18, %s16_s18  }
   0x2   : > { %p192_p1 = scmp.lt.s32.totalorder %s638_s18, 5 }
   0x4   : > { %p193_p2 = pnand %p536_p0, %p192_p1 }
   0x5   : > { %p225_p3 = scmp.lt.s32.totalorder (!%p193_p2), %s532_s19, 3 }
   0x6   : > { %196 = sbr.rel (%p193_p2) target bundleno = 188 (0xbc), region = 32 }
   0xb   : > { %v614_v0 = vld [vmem:[%s751_s1 + $0x38] sm:$0xff]  ;;  %v613_v2 = vld [vmem:[%s751_s1 + $0x30] sm:$0xff]  ;;  %v612_v4 = vld [vmem:[%s751_s1 + $0x28] sm:$0xff]  ;;  %s757_s19 = smov (!%p225_p3, %s532_s19), 3  ;;  %vm402_vm0 = vcmask 261120   ;;  %vm427_vm1 = vcmask 257024  }
   0xc   : > { %v622_v1 = vld [vmem:[%s751_s1 + $0x78] sm:$0xff]  ;;  %376 = vmatpush.bf16.msra.mxu0 %v614_v0  ;;  %v621_v3 = vld [vmem:[%s751_s1 + $0x70] sm:$0xff]  ;;  %v620_v5 = vld [vmem:[%s751_s1 + $0x68] sm:$0xff]  ;;  %s606_s15 = sshll.u32 %s757_s19, 3  ;;  %s539_s10 = sshll.u32 %s757_s19, 2  ;;  %vm410_vm2 = vcmask 253952  }
   0xd   : > { %389 = vmatpush.bf16.msra.mxu1 %v622_v1  ;;  %v611_v6 = vld [vmem:[%s751_s1 + $0x20] sm:$0xff]  ;;  %v610_v8 = vld [vmem:[%s751_s1 + $0x18] sm:$0xff]  ;;  %v609_v10 = vld [vmem:[%s751_s1 + $0x10] sm:$0xff]  ;;  %s229_s24 = scalar_lea.vmem %s750_s0, %s606_s15  ;;  %s233_s13 = scalar_lea.vmem %s753_s3, %s539_s10 }
   0xe   : > { %v619_v7 = vld [vmem:[%s751_s1 + $0x60] sm:$0xff]  ;;  %v618_v9 = vld [vmem:[%s751_s1 + $0x58] sm:$0xff]  ;;  %v617_v11 = vld [vmem:[%s751_s1 + $0x50] sm:$0xff]  ;;  %s236_s16 = scalar_lea.vmem %s754_s4, %s757_s19  ;;  %s239_s21 = scalar_lea.vmem %s755_s5, %s757_s19 }
   0xf   : > { %v608_v12 = vld [vmem:[%s751_s1 + $0x8] sm:$0xff]  ;;  %v240_v14 = vld [vmem:[%s229_s24] sm:$0xff] }
  0x10   : > { %377 = vmatpush.bf16.msra.mxu0 %v613_v2  ;;  %v616_v13 = vld [vmem:[%s751_s1 + $0x48] sm:$0xff]  ;;  %v274_v15 = vunpack.c.l.b16 %v240_v14  ;;  %v275_v16 = vunpack.c.h.b16 %v240_v14  ;;  %v607_v17 = vld [vmem:[%s751_s1] sm:$0xff] }
  0x11   : > { %390 = vmatpush.bf16.msra.mxu1 %v621_v3  ;;  %v615_v18 = vld [vmem:[%s751_s1 + $0x40] sm:$0xff] }
  0x12   : > { %v276_v19 = vpack.c.b16 %v274_v15, %v274_v15  ;;  %v277_v20 = vpack.c.b16 %v275_v16, %v275_v16  ;;  %v631_v21 = vld [vmem:[%s752_s2] ss:$0 sm:$0xff] }
  0x14   : > { %378 = vmatpush.bf16.msra.mxu0 %v612_v4 }
  0x15   : > { %391 = vmatpush.bf16.msra.mxu1 %v620_v5 }
  0x18   : > { %379 = vmatpush.bf16.msra.mxu0 %v611_v6 }
  0x19   : > { %392 = vmatpush.bf16.msra.mxu1 %v619_v7 }
  0x1c   : > { %380 = vmatpush.bf16.msra.mxu0 %v610_v8 }
  0x1d   : > { %393 = vmatpush.bf16.msra.mxu1 %v618_v9 }
  0x20   : > { %381 = vmatpush.bf16.msra.mxu0 %v609_v10 }
  0x21   : > { %394 = vmatpush.bf16.msra.mxu1 %v617_v11 }
  0x24   : > { %382 = vmatpush.bf16.msra.mxu0 %v608_v12 }
  0x25   : > { %395 = vmatpush.bf16.msra.mxu1 %v616_v13 }
  0x28   : > { %383 = vmatpush.bf16.msra.mxu0 %v607_v17 }
  0x29   : > { %396 = vmatpush.bf16.msra.mxu1 %v615_v18 }
  0x2b   : > { %384 = vmatmul.bf16.vlgmr.msra.gmra.mxu0 %v276_v19 }
  0x2c   : > { %397 = vmatmul.bf16.vlgmr.msra.gmra.mxu1 %v277_v20 }
  0xa8   : > { %v385_v22 = vpop.f32.mrf.mxu0 }
  0xa9   : > { %v398_v23 = vpop.f32.mrf.mxu1 }
  0xaa   : > { %v399_v24 = vadd.f32 %v398_v23, %v385_v22 }
  0xac   : > { %v403_v25 = vsel %vm402_vm0, %v399_v24, 0.0  ;;  %v412_v26 = vmul.f32 %v399_v24, %v399_v24  ;;  %v425_v27 = vadd.f32 %v631_v21, %v399_v24 }
  0xad   : > { %v404_v28 = vrot.slane %v403_v25, 4 }
  0xae   : > { %v413_v29 = vsel %vm402_vm0, %v412_v26, 0.0  ;;  %v426_v30 = vpack.c.bf16 %v425_v27, %v425_v27 }
  0xaf   : > { %v405_v31 = vadd.f32 %v404_v28, %v403_v25  ;;  %v414_v32 = vrot.slane %v413_v29, 4 }
  0xb0   : > { %428 = vst.msk [vmem:[%s233_s13] sm:$0xf] %vm427_vm1, %v426_v30  ;;  %v387_v35 = vpop.f32.mrf.mxu0 }
  0xb1   : > { %v406_v33 = vrot.slane %v405_v31, 2  ;;  %v415_v34 = vadd.f32 %v414_v32, %v413_v29  ;;  %v400_v36 = vpop.f32.mrf.mxu1 }
  0xb3   : > { %v407_v37 = vadd.f32 %v406_v33, %v405_v31  ;;  %v416_v38 = vrot.slane %v415_v34, 2 }
  0xb5   : > { %v408_v39 = vrot.slane %v407_v37, 1  ;;  %v417_v40 = vadd.f32 %v416_v38, %v415_v34 }
  0xb7   : > { %v409_v41 = vadd.f32 %v408_v39, %v407_v37  ;;  %v418_v42 = vrot.slane %v417_v40, 1 }
  0xb9   : > { %411 = vst.msk [vmem:[%s236_s16] sm:$0x1] %vm410_vm2, %v409_v41  ;;  %v419_v43 = vadd.f32 %v418_v42, %v417_v40 }
  0xbb   : > { %420 = vst.msk [vmem:[%s239_s21] sm:$0x1] %vm410_vm2, %v419_v43 }
  0xbc PF: > { %s16_s18 = sadd.s32 1, %s638_s18  }
  0xbd   : > { %p13_p4 = scmp.ge.s32.totalorder %s16_s18, 6  }
  0xbf   :  { %15 = sbr.rel (!%p13_p4) target bundleno = 1 (0x1), region = 86 }

</bundles_post_ra>
